<compile_context>
chip_gen: v7x
topology: tpu7x:2x2x1
jax: 0.10.0
libtpu: 0.0.40
codegen_flags: <defaults>
</compile_context>

<pallas_src>
import functools

import jax
import jax.numpy as jnp
from jax import lax
from jax.experimental import pallas as pl
from jax.experimental.pallas import tpu as pltpu

LN_EPS = 1e-5                      # torch.nn.LayerNorm default
_INV_SQRT2 = 0.7071067811865476


def _round_up(a, b):
    return (a + b - 1) // b * b


def _cdiv(a, b):
    return (a + b - 1) // b


def _vmem_capacity_and_kind():
    """Best-effort (VMEM bytes, device-kind string) for the local TPU generation."""
    kind = ""
    try:
        kind = jax.devices()[0].device_kind.lower()
    except Exception:
        pass
    vmem = None
    try:
        vmem = getattr(pltpu.get_tpu_info(), "vmem_capacity_bytes", None)
    except Exception:
        vmem = None
    if vmem is None:
        vmem = (64 if "v7" in kind else 128) * 1024 * 1024   # v7x has 64 MiB per TensorCore
    return int(vmem), kind


def resolve_cast_x_bf16():
    """Ship x to the kernel in bf16 on v6e/v7x (halves x DMA + VMEM footprint)."""
    vmem_cap, kind = _vmem_capacity_and_kind()
    return ("v6" in kind) or ("v7" in kind) or (vmem_cap <= 64 * 1024 * 1024)


def _weight_chunk_bytes(E, th, compute_itemsize=2):
    # Double-buffered bf16 W1/W2 chunks + f32 b1 chunk.
    return 2 * (2 * E * th * compute_itemsize + th * 4)


def _select_hidden_chunk(E, H, vmem_cap, kind):
    """Pick the hidden-dim chunk th (and padded H). th == H means fully-resident weights,
    i.e. the weights are DMA'd exactly once instead of once per row tile."""
    budget = int(vmem_cap * 0.75)
    if _weight_chunk_bytes(E, H) <= int(budget * 0.55):
        return H, H
    th_target = 512 if "v7" in kind else 1024          # fewer inner steps on v5e/v6e
    for th in (th_target, 1024, 512, 256, 128):
        if th <= H and _weight_chunk_bytes(E, th) <= int(budget * 0.6):
            return th, _round_up(H, th)
    return 128, _round_up(H, 128)


def _select_row_tile(M, E, th, vmem_cap, kind, x_itemsize, out_itemsize, compute_itemsize=2):
    """Pick the row tile tm: big enough to pass the per-generation roofline knee
    (~240 flop/B v5e, ~670 v6e, ~310 v7x), small enough for the real VMEM capacity."""
    budget = int(vmem_cap * 0.75)
    # Per-row bytes: double-buffered x/out tiles + xn (compute dtype) + acc (f32) scratch.
    per_tm = E * (2 * x_itemsize + 2 * out_itemsize + compute_itemsize + 4)
    avail = max(budget - _weight_chunk_bytes(E, th, compute_itemsize) - 2 * 3 * E * 4,
                8 * per_tm)
    tm_cap = max(avail // per_tm, 8)

    tm_target = 1024 if "v6" in kind else 512
    align = 16 if min(x_itemsize, compute_itemsize) < 4 else 8
    m_min = _round_up(M, align)

    hw_cap = min(tm_target, tm_cap)
    if m_min <= hw_cap:
        tm = m_min
    else:
        tm = hw_cap
        if tm >= 512:
            tm = tm // 256 * 256
        elif tm >= 128:
            tm = tm // 128 * 128
        else:
            tm = max(align, tm // align * align)

    # v7x has 2 TensorCores: make sure the "parallel" row axis has >= 2 tiles for large M.
    if "v7" in kind and M >= 512 and _cdiv(M, tm) < 2:
        tm = max(128, _round_up(_cdiv(M, 2), 128))
    return tm


def _ffn_kernel(x_ref, gamma_ref, beta_ref, w1_ref, b1_ref, w2_ref, b2_ref,
                o_ref, xn_ref, acc_ref, *, approximate_gelu):
    """Grid = (row tiles, hidden chunks); the hidden-chunk axis is the (innermost) reduction."""
    j = pl.program_id(1)

    @pl.when(j == 0)
    def _():
        # LayerNorm once per row tile (f32); stash normalized rows in matmul dtype and zero
        # the f32 output accumulator.
        x = x_ref[...].astype(jnp.float32)
        mu = jnp.mean(x, axis=-1, keepdims=True)
        xc = x - mu
        var = jnp.mean(xc * xc, axis=-1, keepdims=True)
        xn = xc * lax.rsqrt(var + LN_EPS)
        xn = xn * gamma_ref[...] + beta_ref[...]
        xn_ref[...] = xn.astype(xn_ref.dtype)
        acc_ref[...] = jnp.zeros_like(acc_ref)

    # Linear(E -> th chunk): bf16 operands, f32 accumulation on the MXU.
    h = jnp.dot(xn_ref[...], w1_ref[...], preferred_element_type=jnp.float32)
    h = h + b1_ref[...]
    if approximate_gelu:
        # tanh GELU runs on the EUP (separate VLIW slot) — frees VALU slots on v6e/v7x, but
        # deviates slightly from torch.nn.GELU's exact-erf default.
        h = jax.nn.gelu(h, approximate=True)
    else:
        # Exact (erf) GELU to match torch.nn.GELU default.
        h = 0.5 * h * (1.0 + lax.erf(h * jnp.float32(_INV_SQRT2)))
    # Partial Linear(th chunk -> E), accumulated in f32.
    acc_ref[...] += jnp.dot(h.astype(w2_ref.dtype), w2_ref[...],
                            preferred_element_type=jnp.float32)

    @pl.when(j == pl.num_programs(1) - 1)
    def _():
        o_ref[...] = (acc_ref[...] + b2_ref[...]).astype(o_ref.dtype)


def prepare_ffn_params(gamma, beta, w1, b1, w2, b2, *, compute_dtype=jnp.bfloat16):
    """One-time parameter prep (call once, reuse across feed_forward calls): casts weights to the
    matmul dtype, pads H to the chosen chunk size, returns (params_tuple, th)."""
    E, H = w1.shape
    assert w2.shape == (H, E)
    vmem_cap, kind = _vmem_capacity_and_kind()
    th, h_pad = _select_hidden_chunk(E, H, vmem_cap, kind)

    w1c = w1.astype(compute_dtype)
    w2c = w2.astype(compute_dtype)
    b1f = b1.astype(jnp.float32).reshape(1, H)
    if h_pad != H:
        # Zero-padding H is exact: padded W1 cols give h=0 -> gelu(0)=0 -> contributes 0 to acc.
        w1c = jnp.pad(w1c, ((0, 0), (0, h_pad - H)))
        w2c = jnp.pad(w2c, ((0, h_pad - H), (0, 0)))
        b1f = jnp.pad(b1f, ((0, 0), (0, h_pad - H)))

    params = (gamma.astype(jnp.float32).reshape(1, E),
              beta.astype(jnp.float32).reshape(1, E),
              w1c, b1f, w2c,
              b2.astype(jnp.float32).reshape(1, E))
    return params, th


@functools.partial(jax.jit,
                   static_argnames=("th", "compute_dtype", "gelu_approximate", "cast_x_bf16"))
def feed_forward(x, gamma2, beta2, w1c, b1f, w2c, b2f, *, th,
                 compute_dtype=jnp.bfloat16, gelu_approximate=False, cast_x_bf16=None):
    """x: (B, S, E) -> (B, S, E).  Parameters must come from prepare_ffn_params."""
    B, S, E = x.shape
    Hp = w1c.shape[1]
    assert w1c.shape[0] == E and w2c.shape == (Hp, E) and Hp % th == 0
    M = B * S

    vmem_cap, kind = _vmem_capacity_and_kind()
    if cast_x_bf16 is None:
        cast_x_bf16 = resolve_cast_x_bf16()

    x2 = x.reshape(M, E)
    if cast_x_bf16:
        x2 = x2.astype(jnp.bfloat16)
    xb = x2.dtype.itemsize
    ob = jnp.dtype(x.dtype).itemsize
    cb = jnp.dtype(compute_dtype).itemsize

    tm = _select_row_tile(M, E, th, vmem_cap, kind, xb, ob, cb)
    m_pad = _round_up(M, tm)
    if m_pad != M:
        # Padded rows are harmless: var + eps > 0 so LN can't NaN; rows are sliced off below.
        x2 = jnp.pad(x2, ((0, m_pad - M), (0, 0)))

    grid = (m_pad // tm, Hp // th)

    # Explicit VMEM budget from the actual footprint, capped by the generation's real capacity.
    footprint = (2 * tm * E * (xb + ob)                  # double-buffered x / out tiles
                 + _weight_chunk_bytes(E, th, cb)        # double-buffered W1/W2/b1 chunks
                 + 2 * 3 * E * 4                         # gamma, beta, b2
                 + tm * E * (cb + 4))                    # xn + acc scratch
    vmem_limit = min(vmem_cap,
                     max(32 * 1024 * 1024, int(footprint * 1.3) + (2 << 20)))

    kernel = functools.partial(_ffn_kernel, approximate_gelu=gelu_approximate)

    out2 = pl.pallas_call(
        kernel,
        out_shape=jax.ShapeDtypeStruct((m_pad, E), x.dtype),
        grid_spec=pltpu.PrefetchScalarGridSpec(
            num_scalar_prefetch=0,
            grid=grid,
            in_specs=[
                pl.BlockSpec((tm, E), lambda i, j: (i, 0)),    # x row tile
                pl.BlockSpec((1, E), lambda i, j: (0, 0)),     # gamma
                pl.BlockSpec((1, E), lambda i, j: (0, 0)),     # beta
                pl.BlockSpec((E, th), lambda i, j: (0, j)),    # W1 chunk (E, th)
                pl.BlockSpec((1, th), lambda i, j: (0, j)),    # b1 chunk
                pl.BlockSpec((th, E), lambda i, j: (j, 0)),    # W2 chunk (th, E)
                pl.BlockSpec((1, E), lambda i, j: (0, 0)),     # b2
            ],
            out_specs=pl.BlockSpec((tm, E), lambda i, j: (i, 0)),
            scratch_shapes=[
                pltpu.VMEM((tm, E), compute_dtype),            # LayerNorm output (reused per chunk)
                pltpu.VMEM((tm, E), jnp.float32),              # f32 output accumulator
            ],
        ),
        compiler_params=pltpu.CompilerParams(
            dimension_semantics=("parallel", "arbitrary"),
            vmem_limit_bytes=vmem_limit,
        ),
    )(x2, gamma2, beta2, w1c, b1f, w2c, b2f)

    if m_pad != M:
        out2 = out2[:M]
    return out2.reshape(B, S, E)


def _reference(x, gamma, beta, w1, b1, w2, b2, *, compute_dtype=jnp.bfloat16,
               gelu_approximate=False, cast_x_bf16=False):
    """Pure-JAX reference emulating the kernel's precision choices."""
    xf = x.astype(jnp.bfloat16) if cast_x_bf16 else x
    xf = xf.astype(jnp.float32)
    mu = jnp.mean(xf, axis=-1, keepdims=True)
    var = jnp.mean((xf - mu) ** 2, axis=-1, keepdims=True)
    xn = (xf - mu) * lax.rsqrt(var + LN_EPS) * gamma + beta
    h = jnp.dot(xn.astype(compute_dtype), w1.astype(compute_dtype),
                preferred_element_type=jnp.float32) + b1
    if gelu_approximate:
        h = jax.nn.gelu(h, approximate=True)
    else:
        h = 0.5 * h * (1.0 + lax.erf(h * jnp.float32(_INV_SQRT2)))
    y = jnp.dot(h.astype(compute_dtype), w2.astype(compute_dtype),
                preferred_element_type=jnp.float32) + b2
    return y.astype(x.dtype)


if __name__ == "__main__":
    # Small shapes: batch=2, seq=8, embedding_dim=32, hidden_dim=64.
    B, S, E, H = 2, 8, 32, 64

    key = jax.random.PRNGKey(0)
    kx, kw1, kb1, kw2, kb2 = jax.random.split(key, 5)

    x = jax.random.normal(kx, (B, S, E), dtype=jnp.float32)

    # Deterministic synthetic params (Linear stored as (in, out) = torch W^T).
    gamma = jnp.ones((E,), jnp.float32)
    beta = jnp.zeros((E,), jnp.float32)
    w1 = jax.random.normal(kw1, (E, H), dtype=jnp.float32) * (1.0 / jnp.sqrt(E))
    b1 = jax.random.normal(kb1, (H,), dtype=jnp.float32) * 0.01
    w2 = jax.random.normal(kw2, (H, E), dtype=jnp.float32) * (1.0 / jnp.sqrt(H))
    b2 = jax.random.normal(kb2, (E,), dtype=jnp.float32) * 0.01

    # One-time weight prep (cast/pad outside the per-call path).
    params, th = prepare_ffn_params(gamma, beta, w1, b1, w2, b2)
    cast_x = resolve_cast_x_bf16()

    out = feed_forward(x, *params, th=th, cast_x_bf16=cast_x)
    out = jax.block_until_ready(out)

    ref = _reference(x, gamma, beta, w1, b1, w2, b2, cast_x_bf16=cast_x)
    assert out.shape == (B, S, E)
    assert jnp.allclose(out, ref, atol=3e-3, rtol=3e-3), "mismatch vs reference"

    print("KERNEL_OK")
</pallas_src>

<mosaic_0001>
module attributes {stable_mosaic.version = 11 : i64} {
  func.func @_ffn_kernel(%arg0: i32, %arg1: i32, %arg2: memref<16x32xf32, #tpu.memory_space<vmem>>, %arg3: memref<1x32xf32, #tpu.memory_space<vmem>>, %arg4: memref<1x32xf32, #tpu.memory_space<vmem>>, %arg5: memref<32x64xbf16, #tpu.memory_space<vmem>>, %arg6: memref<1x64xf32, #tpu.memory_space<vmem>>, %arg7: memref<64x32xbf16, #tpu.memory_space<vmem>>, %arg8: memref<1x32xf32, #tpu.memory_space<vmem>>, %arg9: memref<16x32xf32, #tpu.memory_space<vmem>>, %arg10: memref<16x32xbf16, #tpu.memory_space<vmem>>, %arg11: memref<16x32xf32, #tpu.memory_space<vmem>>) attributes {dimension_semantics = [#tpu.dimension_semantics<parallel>, #tpu.dimension_semantics<arbitrary>], iteration_bounds = array<i64: 1, 1>, scalar_prefetch = 0 : i64, scratch_operands = 2 : i64, tpu.core_type = #tpu.core_type<tc>, window_params = [{transform_indices = @transform_0, window_bounds = array<i64: 16, 32>}, {pipeline_mode = #tpu.pipeline_mode<synchronous>, transform_indices = @transform_1, window_bounds = array<i64: 1, 32>}, {pipeline_mode = #tpu.pipeline_mode<synchronous>, transform_indices = @transform_2, window_bounds = array<i64: 1, 32>}, {transform_indices = @transform_3, window_bounds = array<i64: 32, 64>}, {transform_indices = @transform_4, window_bounds = array<i64: 1, 64>}, {transform_indices = @transform_5, window_bounds = array<i64: 64, 32>}, {pipeline_mode = #tpu.pipeline_mode<synchronous>, transform_indices = @transform_6, window_bounds = array<i64: 1, 32>}, {transform_indices = @transform_7, window_bounds = array<i64: 16, 32>}]} {
    %c0_i32 = arith.constant 0 : i32
    %0 = arith.cmpi eq, %arg1, %c0_i32 : i32
    %1 = arith.extui %0 : i1 to i32
    %c0_i32_0 = arith.constant 0 : i32
    %2 = arith.cmpi ne, %1, %c0_i32_0 : i32
    scf.if %2 {
      %c0_18 = arith.constant 0 : index
      %c0_19 = arith.constant 0 : index
      %26 = vector.load %arg2[%c0_18, %c0_19] : memref<16x32xf32, #tpu.memory_space<vmem>>, vector<16x32xf32>
      %cst_20 = arith.constant dense<0.000000e+00> : vector<16xf32>
      %27 = vector.multi_reduction <add>, %26, %cst_20 [1] : vector<16x32xf32> to vector<16xf32>
      %28 = vector.shape_cast %27 : vector<16xf32> to vector<16x1xf32>
      %cst_21 = arith.constant 3.200000e+01 : f32
      %29 = vector.broadcast %cst_21 : f32 to vector<16x1xf32>
      %30 = arith.divf %28, %29 : vector<16x1xf32>
      %31 = vector.broadcast %30 : vector<16x1xf32> to vector<16x32xf32>
      %32 = arith.subf %26, %31 : vector<16x32xf32>
      %33 = arith.mulf %32, %32 : vector<16x32xf32>
      %cst_22 = arith.constant dense<0.000000e+00> : vector<16xf32>
      %34 = vector.multi_reduction <add>, %33, %cst_22 [1] : vector<16x32xf32> to vector<16xf32>
      %35 = vector.shape_cast %34 : vector<16xf32> to vector<16x1xf32>
      %cst_23 = arith.constant 3.200000e+01 : f32
      %36 = vector.broadcast %cst_23 : f32 to vector<16x1xf32>
      %37 = arith.divf %35, %36 : vector<16x1xf32>
      %cst_24 = arith.constant 9.99999974E-6 : f32
      %38 = vector.broadcast %cst_24 : f32 to vector<16x1xf32>
      %39 = arith.addf %37, %38 : vector<16x1xf32>
      %40 = math.rsqrt %39 : vector<16x1xf32>
      %41 = vector.broadcast %40 : vector<16x1xf32> to vector<16x32xf32>
      %42 = arith.mulf %32, %41 : vector<16x32xf32>
      %c0_25 = arith.constant 0 : index
      %c0_26 = arith.constant 0 : index
      %43 = vector.load %arg3[%c0_25, %c0_26] : memref<1x32xf32, #tpu.memory_space<vmem>>, vector<1x32xf32>
      %44 = vector.broadcast %43 : vector<1x32xf32> to vector<16x32xf32>
      %45 = arith.mulf %42, %44 : vector<16x32xf32>
      %c0_27 = arith.constant 0 : index
      %c0_28 = arith.constant 0 : index
      %46 = vector.load %arg4[%c0_27, %c0_28] : memref<1x32xf32, #tpu.memory_space<vmem>>, vector<1x32xf32>
      %47 = vector.broadcast %46 : vector<1x32xf32> to vector<16x32xf32>
      %48 = arith.addf %45, %47 : vector<16x32xf32>
      %49 = arith.truncf %48 : vector<16x32xf32> to vector<16x32xbf16>
      %c0_29 = arith.constant 0 : index
      %c0_30 = arith.constant 0 : index
      %50 = vector.load %arg10[%c0_29, %c0_30] : memref<16x32xbf16, #tpu.memory_space<vmem>>, vector<16x32xbf16>
      tpu.vector_store %arg10[%c0_29, %c0_30], %49 {strides = array<i32>} : memref<16x32xbf16, #tpu.memory_space<vmem>>, vector<16x32xbf16>,
      %cst_31 = arith.constant 0.000000e+00 : f32
      %51 = vector.broadcast %cst_31 : f32 to vector<16x32xf32>
      %c0_32 = arith.constant 0 : index
      %c0_33 = arith.constant 0 : index
      %52 = vector.load %arg11[%c0_32, %c0_33] : memref<16x32xf32, #tpu.memory_space<vmem>>, vector<16x32xf32>
      tpu.vector_store %arg11[%c0_32, %c0_33], %51 {strides = array<i32>} : memref<16x32xf32, #tpu.memory_space<vmem>>, vector<16x32xf32>,
    } else {
    }
    %c0 = arith.constant 0 : index
    %c0_1 = arith.constant 0 : index
    %3 = vector.load %arg10[%c0, %c0_1] : memref<16x32xbf16, #tpu.memory_space<vmem>>, vector<16x32xbf16>
    %c0_2 = arith.constant 0 : index
    %c0_3 = arith.constant 0 : index
    %4 = vector.load %arg5[%c0_2, %c0_3] : memref<32x64xbf16, #tpu.memory_space<vmem>>, vector<32x64xbf16>
    %cst = arith.constant dense<0.000000e+00> : vector<16x64xf32>
    %5 = tpu.matmul %3, %4, %cst {dimension_numbers = #tpu.dot_dimension_numbers<[1], [0], [0], [1], [0, 0, 1, 1], [], []>} : vector<16x32xbf16>, vector<32x64xbf16>, vector<16x64xf32> -> vector<16x64xf32>
    %c0_4 = arith.constant 0 : index
    %c0_5 = arith.constant 0 : index
    %6 = vector.load %arg6[%c0_4, %c0_5] : memref<1x64xf32, #tpu.memory_space<vmem>>, vector<1x64xf32>
    %7 = vector.broadcast %6 : vector<1x64xf32> to vector<16x64xf32>
    %8 = arith.addf %5, %7 : vector<16x64xf32>
    %cst_6 = arith.constant 5.000000e-01 : f32
    %9 = vector.broadcast %cst_6 : f32 to vector<16x64xf32>
    %10 = arith.mulf %9, %8 : vector<16x64xf32>
    %cst_7 = arith.constant 0.707106769 : f32
    %11 = vector.broadcast %cst_7 : f32 to vector<16x64xf32>
    %12 = arith.mulf %8, %11 : vector<16x64xf32>
    %13 = math.erf %12 : vector<16x64xf32>
    %cst_8 = arith.constant 1.000000e+00 : f32
    %14 = vector.broadcast %cst_8 : f32 to vector<16x64xf32>
    %15 = arith.addf %14, %13 : vector<16x64xf32>
    %16 = arith.mulf %10, %15 : vector<16x64xf32>
    %c0_9 = arith.constant 0 : index
    %c0_10 = arith.constant 0 : index
    %17 = vector.load %arg11[%c0_9, %c0_10] : memref<16x32xf32, #tpu.memory_space<vmem>>, vector<16x32xf32>
    %18 = arith.truncf %16 : vector<16x64xf32> to vector<16x64xbf16>
    %c0_11 = arith.constant 0 : index
    %c0_12 = arith.constant 0 : index
    %19 = vector.load %arg7[%c0_11, %c0_12] : memref<64x32xbf16, #tpu.memory_space<vmem>>, vector<64x32xbf16>
    %cst_13 = arith.constant dense<0.000000e+00> : vector<16x32xf32>
    %20 = tpu.matmul %18, %19, %cst_13 {dimension_numbers = #tpu.dot_dimension_numbers<[1], [0], [0], [1], [0, 0, 1, 1], [], []>} : vector<16x64xbf16>, vector<64x32xbf16>, vector<16x32xf32> -> vector<16x32xf32>
    %21 = arith.addf %17, %20 : vector<16x32xf32>
    %c0_14 = arith.constant 0 : index
    %c0_15 = arith.constant 0 : index
    %22 = vector.load %arg11[%c0_14, %c0_15] : memref<16x32xf32, #tpu.memory_space<vmem>>, vector<16x32xf32>
    tpu.vector_store %arg11[%c0_14, %c0_15], %21 {strides = array<i32>} : memref<16x32xf32, #tpu.memory_space<vmem>>, vector<16x32xf32>,
    %c0_i32_16 = arith.constant 0 : i32
    %23 = arith.cmpi eq, %arg1, %c0_i32_16 : i32
    %24 = arith.extui %23 : i1 to i32
    %c0_i32_17 = arith.constant 0 : i32
    %25 = arith.cmpi ne, %24, %c0_i32_17 : i32
    scf.if %25 {
      %c0_18 = arith.constant 0 : index
      %c0_19 = arith.constant 0 : index
      %26 = vector.load %arg11[%c0_18, %c0_19] : memref<16x32xf32, #tpu.memory_space<vmem>>, vector<16x32xf32>
      %c0_20 = arith.constant 0 : index
      %c0_21 = arith.constant 0 : index
      %27 = vector.load %arg8[%c0_20, %c0_21] : memref<1x32xf32, #tpu.memory_space<vmem>>, vector<1x32xf32>
      %28 = vector.broadcast %27 : vector<1x32xf32> to vector<16x32xf32>
      %29 = arith.addf %26, %28 : vector<16x32xf32>
      %c0_22 = arith.constant 0 : index
      %c0_23 = arith.constant 0 : index
      %30 = vector.load %arg9[%c0_22, %c0_23] : memref<16x32xf32, #tpu.memory_space<vmem>>, vector<16x32xf32>
      tpu.vector_store %arg9[%c0_22, %c0_23], %29 {strides = array<i32>} : memref<16x32xf32, #tpu.memory_space<vmem>>, vector<16x32xf32>,
    } else {
    }
    return
  }
  func.func @transform_0(%arg0: i32, %arg1: i32) -> (i32, i32) {
    %c0_i32 = arith.constant 0 : i32
    %c0_i32_0 = arith.constant 0 : i32
    return %arg0, %c0_i32 : i32, i32
  }
  func.func @transform_1(%arg0: i32, %arg1: i32) -> (i32, i32) {
    %c0_i32 = arith.constant 0 : i32
    %c0_i32_0 = arith.constant 0 : i32
    %c0_i32_1 = arith.constant 0 : i32
    return %c0_i32, %c0_i32_0 : i32, i32
  }
  func.func @transform_2(%arg0: i32, %arg1: i32) -> (i32, i32) {
    %c0_i32 = arith.constant 0 : i32
    %c0_i32_0 = arith.constant 0 : i32
    %c0_i32_1 = arith.constant 0 : i32
    return %c0_i32, %c0_i32_0 : i32, i32
  }
  func.func @transform_3(%arg0: i32, %arg1: i32) -> (i32, i32) {
    %c0_i32 = arith.constant 0 : i32
    %c0_i32_0 = arith.constant 0 : i32
    return %c0_i32, %arg1 : i32, i32
  }
  func.func @transform_4(%arg0: i32, %arg1: i32) -> (i32, i32) {
    %c0_i32 = arith.constant 0 : i32
    %c0_i32_0 = arith.constant 0 : i32
    return %c0_i32, %arg1 : i32, i32
  }
  func.func @transform_5(%arg0: i32, %arg1: i32) -> (i32, i32) {
    %c0_i32 = arith.constant 0 : i32
    %c0_i32_0 = arith.constant 0 : i32
    return %arg1, %c0_i32 : i32, i32
  }
  func.func @transform_6(%arg0: i32, %arg1: i32) -> (i32, i32) {
    %c0_i32 = arith.constant 0 : i32
    %c0_i32_0 = arith.constant 0 : i32
    %c0_i32_1 = arith.constant 0 : i32
    return %c0_i32, %c0_i32_0 : i32, i32
  }
  func.func @transform_7(%arg0: i32, %arg1: i32) -> (i32, i32) {
    %c0_i32 = arith.constant 0 : i32
    %c0_i32_0 = arith.constant 0 : i32
    return %arg0, %c0_i32 : i32, i32
  }
}

</mosaic_0001>

<bundles_post_ra>
// kernel: feed_forward.1
= control target key start
LH: loop header
LB: loop body
LE: loop exit
PB: predicated region body
PF: predicated region fallthrough
CT: control target
= control target key end

     0   :  { %vm34_vm0 = vcmask 261120   ;;  %s467_s0 = inlined_call_operand.vmem [shape: f32[16,32], index: 0, kind: input, shape index: {}]   ;;  %s468_s1 = inlined_call_operand.vmem [shape: f32[1,32], index: 1, kind: input, shape index: {}]   ;;  %s469_s2 = inlined_call_operand.vmem [shape: f32[1,32], index: 2, kind: input, shape index: {}]   ;;  %s470_s3 = inlined_call_operand.vmem [shape: bf16[32,64], index: 3, kind: input, shape index: {}]   ;;  %s471_s4 = inlined_call_operand.vmem [shape: f32[1,64], index: 4, kind: input, shape index: {}]   ;;  %s472_s5 = inlined_call_operand.vmem [shape: bf16[64,32], index: 5, kind: input, shape index: {}]   ;;  %s473_s6 = inlined_call_operand.vmem [shape: f32[1,32], index: 6, kind: input, shape index: {}]   ;;  %s474_s7 = inlined_call_operand.hbm [shape: f32[16,32], index: 7, kind: output, shape index: {}]  }
   0x1   :  { %v32_v0 = vld [vmem:[%s467_s0] sm:$0xff]  ;;  %v33_v1 = vld [vmem:[%s467_s0 + $0x8] sm:$0xff] }
   0x2   :  { %v35_v2 = vsel %vm34_vm0, %v32_v0, 0.0  ;;  %v38_v3 = vsel %vm34_vm0, %v33_v1, 0.0 }
   0x3   :  { %36 = vadd.xlane.f32.xlu0 %v35_v2 }
   0x4   :  { %12 = vsyncpa [#allocation5], 0  ;;  %v324_v14 = vld [vmem:[%s470_s3] sm:$0xff]   ;;  %v362_v15 = vmov 0.0   ;;  %v325_v16 = vld [vmem:[%s470_s3 + $0x8] sm:$0xff]   ;;  %vm363_vm1 = vmmov 0  }
   0x5   :  { %299 = vmatprep.subr.bf16.mxu0 %v362_v15  ;;  %82 = vst.msk [vmem:[#allocation3] sm:$0xff] %vm34_vm0, %v362_v15  ;;  %83 = vst.msk [vmem:[#allocation3 + $0x8] sm:$0xff] %vm34_vm0, %v362_v15  ;;  %307 = vmatprep.subr.bf16.mxu1 %v362_v15  ;;  %v279_v25 = vld [vmem:[%s468_s1] ss:$0 sm:$0xff]  ;;  %v327_v36 = vld [vmem:[%s472_s5 + $0x8] sm:$0xff]   ;;  %vm198_vm2 = vcmask 523264  }
   0x6   :  { %300 = vmatpush3.bf16.msra.mxu0 %v324_v14  ;;  %303 = vmatprep.mubr.msk.bf16.mxu0 %vm363_vm1, %v362_v15  ;;  %v280_v29 = vld [vmem:[%s469_s2] ss:$0 sm:$0xff]  ;;  %v328_v37 = vld [vmem:[%s472_s5 + $0x10] sm:$0xff]   ;;  %v329_v38 = vld [vmem:[%s472_s5 + $0x18] sm:$0xff]   ;;  %s364_s19 = smov [#allocation4]  }
   0x7   :  { %39 = vadd.xlane.f32.xlu0 %v38_v3  ;;  %301 = vmatprep.subr.bf16.mxu0 %v362_v15  ;;  %v326_v35 = vld [vmem:[%s472_s5] sm:$0xff]   ;;  %s268_s20 = sshll.u32 %s364_s19, 4  ;;  %s269_s20 = int_to_ptr.vmem [resolvable:$true] %s268_s20 }
   0x8   :  { %315 = vmatprep.mubr.msk.bf16.mxu1 %vm363_vm1, %v362_v15  ;;  %308 = vmatpush3.bf16.msra.mxu1 %v326_v35  ;;  %v281_v39 = vld [vmem:[%s471_s4] ss:$0 sm:$0xff]  ;;  %s338_s21 = scalar_lea.vmem %s269_s20, 256  ;;  %p343_p1 = scmp.lt.s32.totalorder %s269_s20, %s269_s20 }
   0x9   :  { %309 = vmatprep.subr.bf16.mxu1 %v362_v15  ;;  %p339_p0 = scmp.ne.s32.totalorder %s269_s20, %s338_s21  ;;  %p344_p2 = scmp.lt.s32.totalorder %s338_s21, %s338_s21 }
   0xa   :  { %302 = vmatpush3.bf16.msra.mxu0 %v325_v16 }
   0xb   :  { %p345_p3 = por %p344_p2, %p343_p1 }
   0xc   :  { %310 = vmatpush3.bf16.msra.mxu1 %v327_v36  ;;  %v163_v57 = vld [vmem:[#allocation3] sm:$0xff]  ;;  %v164_v59 = vld [vmem:[#allocation3 + $0x8] sm:$0xff] }
   0xd   :  { %311 = vmatprep.subr.bf16.mxu1 %v362_v15  ;;  %p346_p4 = pnand %p345_p3, %p339_p0 }
  0x10   :  { %312 = vmatpush3.bf16.msra.mxu1 %v328_v37 }
  0x11   :  { %313 = vmatprep.subr.bf16.mxu1 %v362_v15 }
  0x14   :  { %314 = vmatpush3.bf16.msra.mxu1 %v329_v38 }
  0x90   :  { %v37_v4 = vpop.xlane.xlu0 %36 }
  0x91   :  { %v42_v5 = vmul.f32 0.03125, %v37_v4 }
  0x93   :  { %v44_v6 = vsub.f32 %v32_v0, %v42_v5 }
  0x94   :  { %v40_v7 = vpop.xlane.xlu0 %39 }
  0x95   :  { %v43_v8 = vmul.f32 0.03125, %v40_v7  ;;  %v46_v9 = vmul.f32 %v44_v6, %v44_v6 }
  0x97   :  { %v45_v10 = vsub.f32 %v33_v1, %v43_v8  ;;  %v48_v11 = vsel %vm34_vm0, %v46_v9, 0.0  ;;  %v290_v1 = vld [vmem:[%s473_s6] ss:$0 sm:$0xff] }
  0x98   :  { %49 = vadd.xlane.f32.xlu1 %v48_v11 }
  0x99   :  { %v47_v12 = vmul.f32 %v45_v10, %v45_v10 }
  0x9b   :  { %v51_v13 = vsel %vm34_vm0, %v47_v12, 0.0 }
  0x9c   :  { %52 = vadd.xlane.f32.xlu1 %v51_v13 }
 0x125   :  { %v50_v17 = vpop.xlane.xlu1 %49 }
 0x126   :  { %v54_v18 = vmul.f32 0.03125, %v50_v17 }
 0x128   :  { %v56_v19 = vadd.f32 1e-05, %v54_v18 }
 0x129   :  { %v53_v20 = vpop.xlane.xlu1 %52 }
 0x12a   :  { %330 = vrsqrt.f32 %v56_v19  ;;  %v55_v21 = vmul.f32 0.03125, %v53_v20 }
 0x12c   :  { %v57_v22 = vadd.f32 1e-05, %v55_v21 }
 0x12e   :  { %332 = vrsqrt.f32 %v57_v22 }
 0x134   :  { %v331_v23 = vpop.eup %330 }
 0x135   :  { %v60_v24 = vmul.f32 %v331_v23, %v44_v6 }
 0x137   :  { %v69_v27 = vmul.f32 %v279_v25, %v60_v24 }
 0x138   :  { %v333_v26 = vpop.eup %332 }
 0x139   :  { %v61_v28 = vmul.f32 %v333_v26, %v45_v10  ;;  %v78_v31 = vadd.f32 %v280_v29, %v69_v27 }
 0x13b   :  { %v70_v30 = vmul.f32 %v279_v25, %v61_v28 }
 0x13d   :  { %v79_v32 = vadd.f32 %v280_v29, %v70_v30 }
 0x13f   :  { %v80_v33 = vpack.c.bf16 %v79_v32, %v78_v31 }
 0x141   :  { %81 = vst.msk [vmem:[#allocation2] sm:$0xff] %vm34_vm0, %v80_v33 }
 0x148   :  { %v84_v34 = vld [vmem:[#allocation2] sm:$0xff] }
 0x149   :  { %304 = vmatmul.mubr.msk.bf16.vlgmr.msra.gmra.mrb[0].mxu0 %vm34_vm0, %v84_v34 }
 0x21c   :  { %v146_v40 = vpop.f32.mrb[0].mxu0 }
 0x21d   :  { %v147_v41 = vadd.f32 %v281_v39, %v146_v40  ;;  %v305_v42 = vpop.f32.mrb[1].mxu0 }
 0x21e   :  { %v149_v43 = vpop.f32.mrb[2].mxu0 }
 0x21f   :  { %v155_v44 = vmul.f32 0.70710677, %v147_v41  ;;  %v150_v45 = vadd.f32 %v281_v39, %v149_v43  ;;  %v306_v46 = vpop.f32.mrb[3].mxu0  ;;  %v153_v51 = vmul.f32 0.5, %v147_v41 }
 0x221   :  { %334 = verf.f32 %v155_v44  ;;  %v156_v47 = vmul.f32 0.70710677, %v150_v45  ;;  %v154_v52 = vmul.f32 0.5, %v150_v45 }
 0x223   :  { %336 = verf.f32 %v156_v47 }
 0x22b   :  { %v335_v48 = vpop.eup %334 }
 0x22c   :  { %v159_v49 = vadd.f32 1.0, %v335_v48 }
 0x22d   :  { %v337_v50 = vpop.eup %336 }
 0x22e   :  { %v160_v53 = vadd.f32 1.0, %v337_v50  ;;  %v161_v54 = vmul.f32 %v159_v49, %v153_v51 }
 0x230   :  { %v162_v55 = vmul.f32 %v160_v53, %v154_v52 }
 0x232   :  { %v165_v56 = vpack.c.bf16 %v162_v55, %v161_v54 }
 0x234   :  { %316 = vmatmul.mubr.msk.bf16.vlgmr.msra.gmra.mrb[0].mxu1 %vm198_vm2, %v165_v56 }
 0x307   :  { %v236_v58 = vpop.f32.mrb[0].mxu1 }
 0x308   :  { %v243_v60 = vadd.f32 %v236_v58, %v163_v57  ;;  %v317_v61 = vpop.f32.mrb[1].mxu1 }
 0x309   :  { %v239_v62 = vpop.f32.mrb[2].mxu1 }
 0x30a   :  { %245 = vst.msk [vmem:[#allocation3] sm:$0xff] %vm34_vm0, %v243_v60  ;;  %v244_v63 = vadd.f32 %v239_v62, %v164_v59  ;;  %v318_v0 = vpop.f32.mrb[3].mxu1 }
 0x30c   :  { %246 = vst.msk [vmem:[#allocation3 + $0x8] sm:$0xff] %vm34_vm0, %v244_v63 }
 0x311   :  { %v250_v2 = vld [vmem:[#allocation3] sm:$0xff] }
 0x312   :  { %v259_v3 = vadd.f32 %v290_v1, %v250_v2 }
 0x313   :  { %v251_v4 = vld [vmem:[#allocation3 + $0x8] sm:$0xff] }
 0x314   :  { %v260_v5 = vadd.f32 %v290_v1, %v251_v4  ;;  %261 = vst.msk [vmem:[#allocation4] sm:$0xff] %vm34_vm0, %v259_v3 }
 0x316   :  { %262 = vst.msk [vmem:[#allocation4 + $0x8] sm:$0xff] %vm34_vm0, %v260_v5 }
 0x317   :  { %349 = shalt.err (!%p346_p4)
}
 0x318   :  { %s350_s23 = scalar_lea.hbm %s474_s7, 256 }
 0x319   :  { %p351_p5 = scmp.ne.s32.totalorder %s474_s7, %s350_s23  ;;  %p354_p6 = scmp.lt.u32.totalorder %s350_s23, %s474_s7 }
 0x31b   :  { %p356_p7 = pnand %p354_p6, %p351_p5 }
 0x31d   :  { %359 = shalt.err (!%p356_p7)
}
 0x31e   :  { %s365_s0 = smov 128   ;;  %s366_s28 = smov 8  }
 0x31f   :  { %274 = dma.vmem_to_hbm [thread:$0]  %s269_s20, 256, %s474_s7, [#allocation5], %s365_s0, %s365_s0, %s366_s28  }
 0x320   :  { %360 = dma.done.wait [#allocation5], 256  }
 0x321   :  { %361 = vsyncadd [#allocation5], 4294967040 }
 0x322   :  { %278 = vsyncpa [#allocation5], 1 }

</bundles_post_ra>
